<compile_context>
chip_gen: v6e
topology: v6e:2x2x1
jax: 0.10.0
libtpu: 0.0.40
codegen_flags: <defaults>
</compile_context>

<pallas_src>
import math
from functools import partial

import jax
import jax.numpy as jnp
from jax import lax
from jax.experimental import pallas as pl
from jax.experimental.pallas import tpu as pltpu


_LANE = 128
_TN_MAX = 512                       # lane-tile cap sized for v7x's 64 MiB VMEM
_ROW_TILE = 256                     # tau-row tile of the Gram matrix for large L
_VMEM_LIMIT = 48 * 1024 * 1024      # explicit scoped-VMEM limit, with headroom


def _round_up(x, m):
    return ((x + m - 1) // m) * m


def _pick_tile(n):
    """Channel tile: multiple of 128, <= _TN_MAX, minimizing zero-padding.

    Returns (tile, padded_channel_count)."""
    n128 = _round_up(max(n, 1), _LANE)
    best = None
    for tn in range(_LANE, _TN_MAX + 1, _LANE):
        pad = _round_up(n128, tn)
        if best is None or pad < best[1] or (pad == best[1] and tn > best[0]):
            best = (tn, pad)
    return best


def _pad_axis(x, size, axis):
    cur = x.shape[axis]
    if cur == size:
        return x
    widths = [(0, 0)] * x.ndim
    widths[axis] = (0, size - cur)
    return jnp.pad(x, widths)


# ----------------------------------------------------------------------------
# Kernel 1: Gram matrix on the MXU.
#   G[b, s, t] = sum_n q[b, s, n] * k[b, t, n]
# Channel axis (n) is the reduction grid axis; the f32 output block stays
# resident across it and is accumulated in place (init via pl.when).
# ----------------------------------------------------------------------------
def _corr_gram_kernel(q_ref, k_ref, g_ref):
    # q_ref: (tl, tn), k_ref: (L, tn), g_ref: (tl, L) f32
    @pl.when(pl.program_id(2) == 0)
    def _():
        g_ref[...] = jnp.zeros_like(g_ref)

    g_ref[...] += lax.dot_general(
        q_ref[...], k_ref[...],
        dimension_numbers=(((1,), (1,)), ((), ())),   # contract channel tile
        preferred_element_type=jnp.float32)


def correlation_gram(q_t, k_t, tn, tl):
    """q_t: (B, Lq, Np), k_t: (B, L, Np), Np % tn == 0, Lq % tl == 0.

    Returns G: (B, Lq, L) float32 with G[b, s, t] = sum_n q_t[b,s,n]*k_t[b,t,n]."""
    B, Lq, Np = q_t.shape
    L = k_t.shape[1]
    nr = Lq // tl
    nc = Np // tn
    return pl.pallas_call(
        _corr_gram_kernel,
        out_shape=jax.ShapeDtypeStruct((B, Lq, L), jnp.float32),
        grid_spec=pltpu.PrefetchScalarGridSpec(
            num_scalar_prefetch=0,
            grid=(B, nr, nc),
            in_specs=[
                pl.BlockSpec((None, tl, tn), lambda b, r, c: (b, r, c)),
                pl.BlockSpec((None, L, tn), lambda b, r, c: (b, 0, c)),
            ],
            out_specs=pl.BlockSpec((None, tl, L), lambda b, r, c: (b, r, 0)),
        ),
        compiler_params=pltpu.CompilerParams(
            dimension_semantics=("parallel", "parallel", "arbitrary"),
            vmem_limit_bytes=_VMEM_LIMIT,
        ),
    )(q_t, k_t)


# ----------------------------------------------------------------------------
# Kernel 2: time-delay aggregation (training path)
#   out[b, t, n] = sum_i  v[b, (t + delay[i]) % L, n] * w[b, i]
# delays (shared across batch) and per-batch softmax weights arrive via
# scalar prefetch (SMEM).  The circular wrap uses a VMEM-doubled scratch kept
# in the values' native dtype (halved footprint / load bytes for bf16).
# ----------------------------------------------------------------------------
def _agg_kernel(delay_ref, w_ref, v_ref, out_ref, v2_scr, *, L, top_k):
    b = pl.program_id(0)

    v2_scr[0:L, :] = v_ref[...]
    v2_scr[L:2 * L, :] = v_ref[...]

    # Pull all scalars out of SMEM before any dynamic slicing.
    delays = [delay_ref[i] for i in range(top_k)]
    weights = [w_ref[b, i] for i in range(top_k)]

    acc = v2_scr[pl.ds(delays[0], L), :].astype(jnp.float32) * weights[0]
    for i in range(1, top_k):                 # top_k ~ log L: keep unrolled
        acc = acc + v2_scr[pl.ds(delays[i], L), :].astype(jnp.float32) * weights[i]
    out_ref[...] = acc


def time_delay_agg(v_t, delay, weights, tn):
    """v_t: (B, L, Np), delay: (top_k,) i32, weights: (B, top_k) f32."""
    B, L, Np = v_t.shape
    nc = Np // tn
    top_k = delay.shape[0]
    return pl.pallas_call(
        partial(_agg_kernel, L=L, top_k=top_k),
        out_shape=jax.ShapeDtypeStruct((B, L, Np), jnp.float32),
        grid_spec=pltpu.PrefetchScalarGridSpec(
            num_scalar_prefetch=2,
            grid=(B, nc),
            in_specs=[pl.BlockSpec((None, L, tn), lambda b, c, d, w: (b, 0, c))],
            out_specs=pl.BlockSpec((None, L, tn), lambda b, c, d, w: (b, 0, c)),
            scratch_shapes=[pltpu.VMEM((2 * L, tn), v_t.dtype)],
        ),
        compiler_params=pltpu.CompilerParams(
            dimension_semantics=("parallel", "parallel"),
            vmem_limit_bytes=_VMEM_LIMIT,
        ),
    )(delay, weights, v_t)


# ----------------------------------------------------------------------------
# Forward pass (training mode, output_attention=False, dropout never applied)
# ----------------------------------------------------------------------------
def autocorrelation_forward(queries, keys, values, attn_mask=None, *, factor=1):
    B, L, H, E = queries.shape
    _, S, _, D = values.shape

    if L > S:
        keys = jnp.concatenate([keys, jnp.zeros((B, L - S, H, E), keys.dtype)], axis=1)
        values = jnp.concatenate([values, jnp.zeros((B, L - S, H, D), values.dtype)], axis=1)
    else:
        keys = keys[:, :L]
        values = values[:, :L]

    # (B, L, H, E) -> (B, L, N): n = h*E + e  (ordering is irrelevant for the
    # channel mean; values use their own flattening and are reshaped back).
    N = H * E
    Nv = H * D
    tn, n_pad = _pick_tile(N)
    tnv, nv_pad = _pick_tile(Nv)

    q_t = _pad_axis(queries.reshape(B, L, N), n_pad, axis=2)
    k_t = _pad_axis(keys.reshape(B, L, N), n_pad, axis=2)
    v_t = _pad_axis(values.reshape(B, L, Nv), nv_pad, axis=2)

    # Row (tau) tiling of the Gram matrix: bounds VMEM for large L and gives
    # both v7x TensorCores work even at small B.  Extra zero q rows only
    # produce zero Gram rows that get sliced off.
    if L <= _ROW_TILE:
        tl, lq_pad = L, L
    else:
        tl, lq_pad = _ROW_TILE, _round_up(L, _ROW_TILE)
    q_rows = _pad_axis(q_t, lq_pad, axis=1)

    # Phase 1 (hot path, MXU): G[b, s, t] = sum_n q[b, s, n] * k[b, t, n].
    gram = correlation_gram(q_rows, k_t, tn, tl)[:, :L, :]        # (B, L, L) f32

    # Banded diagonal sum (tiny (B, L, L) gather in XLA glue):
    #   mean_corr[b, tau] = (1/N) * sum_t G[b, (tau + t) % L, t]
    # Zero-padded channels contribute exact zeros, so divide by the true N.
    idx = jnp.arange(L)
    rows = (idx[:, None] + idx[None, :]) % L                       # (L, L)
    mean_value = gram[:, rows, idx[None, :]].sum(axis=-1) / N      # (B, L)

    # Small glue: top-k delays / per-batch softmax weights.
    top_k = int(factor * math.log(L))
    if top_k < 1:
        # torch: the aggregation loop runs 0 times -> zeros output.
        return jnp.zeros((B, L, H, D), jnp.float32), None

    _, index = lax.top_k(jnp.mean(mean_value, axis=0), top_k)
    weights = jnp.take(mean_value, index, axis=1)                  # (B, top_k)
    tmp_corr = jax.nn.softmax(weights, axis=-1)                    # (B, top_k)

    # Phase 2 (hot path, HBM-bound): time delay aggregation.
    agg_t = time_delay_agg(v_t, index.astype(jnp.int32),
                           tmp_corr.astype(jnp.float32), tnv)      # (B, L, nv_pad)

    V = agg_t[:, :, :Nv].reshape(B, L, H, D)
    return V, None                                                  # output_attention=False


# ----------------------------------------------------------------------------
# Pure-JAX reference (mirrors the torch code, FFT-based) for a sanity check.
# ----------------------------------------------------------------------------
def _reference_forward(queries, keys, values, factor=1):
    B, L, H, E = queries.shape
    _, S, _, D = values.shape
    values = values.astype(jnp.float32)
    keys = keys.astype(jnp.float32)
    queries = queries.astype(jnp.float32)
    if L > S:
        zeros = jnp.zeros((B, L - S, H, E), jnp.float32)
        values = jnp.concatenate([values, zeros], 1)
        keys = jnp.concatenate([keys, zeros], 1)
    else:
        values = values[:, :L]
        keys = keys[:, :L]
    q = jnp.transpose(queries, (0, 2, 3, 1))
    k = jnp.transpose(keys, (0, 2, 3, 1))
    corr = jnp.fft.irfft(jnp.fft.rfft(q, axis=-1) * jnp.conj(jnp.fft.rfft(k, axis=-1)),
                         n=L, axis=-1)
    v = jnp.transpose(values, (0, 2, 3, 1))
    top_k = int(factor * math.log(L))
    mean_value = corr.mean(axis=1).mean(axis=1)
    _, index = lax.top_k(mean_value.mean(axis=0), top_k)
    w = mean_value[:, index]
    tmp_corr = jax.nn.softmax(w, axis=-1)
    agg = jnp.zeros_like(v)
    for i in range(top_k):
        pattern = jnp.roll(v, -int(index[i]), axis=-1)
        agg = agg + pattern * tmp_corr[:, i][:, None, None, None]
    return jnp.transpose(agg, (0, 3, 1, 2))


if __name__ == "__main__":
    key = jax.random.PRNGKey(0)
    B, L, H, E = 2, 16, 4, 8
    S, D = 16, 8
    kq, kk, kv = jax.random.split(key, 3)
    queries = jax.random.normal(kq, (B, L, H, E), jnp.float32)
    keys = jax.random.normal(kk, (B, S, H, E), jnp.float32)
    values = jax.random.normal(kv, (B, S, H, D), jnp.float32)

    V, attn = autocorrelation_forward(queries, keys, values, None)
    V = jax.block_until_ready(V)

    V_ref = _reference_forward(queries, keys, values)
    assert V.shape == (B, L, H, D)
    # Tolerance covers MXU f32 multi-pass differences across TPU generations.
    assert bool(jnp.allclose(V, V_ref, atol=5e-3, rtol=5e-3)), "mismatch vs reference"

    print("KERNEL_OK")
</pallas_src>

<mosaic_0001>
module attributes {stable_mosaic.version = 11 : i64} {
  func.func @_corr_gram_kernel(%arg0: i32, %arg1: i32, %arg2: i32, %arg3: memref<1x16x128xf32, #tpu.memory_space<vmem>>, %arg4: memref<1x16x128xf32, #tpu.memory_space<vmem>>, %arg5: memref<1x16x16xf32, #tpu.memory_space<vmem>>) attributes {dimension_semantics = [#tpu.dimension_semantics<parallel>, #tpu.dimension_semantics<parallel>, #tpu.dimension_semantics<arbitrary>], iteration_bounds = array<i64: 2, 1, 1>, scalar_prefetch = 0 : i64, scratch_operands = 0 : i64, tpu.core_type = #tpu.core_type<tc>, window_params = [{transform_indices = @transform_0, window_bounds = array<i64: 1, 16, 128>}, {transform_indices = @transform_1, window_bounds = array<i64: 1, 16, 128>}, {transform_indices = @transform_2, window_bounds = array<i64: 1, 16, 16>}]} {
    %c0_i32 = arith.constant 0 : i32
    %0 = arith.cmpi eq, %arg2, %c0_i32 : i32
    %1 = arith.extui %0 : i1 to i32
    %c0_i32_0 = arith.constant 0 : i32
    %2 = arith.cmpi ne, %1, %c0_i32_0 : i32
    scf.if %2 {
      %cst_12 = arith.constant 0.000000e+00 : f32
      %14 = vector.broadcast %cst_12 : f32 to vector<16x16xf32>
      %c0_13 = arith.constant 0 : index
      %c0_14 = arith.constant 0 : index
      %c0_15 = arith.constant 0 : index
      %15 = vector.load %arg5[%c0_13, %c0_14, %c0_15] : memref<1x16x16xf32, #tpu.memory_space<vmem>>, vector<1x16x16xf32>
      %16 = vector.shape_cast %15 : vector<1x16x16xf32> to vector<16x16xf32>
      %17 = vector.shape_cast %14 : vector<16x16xf32> to vector<1x16x16xf32>
      tpu.vector_store %arg5[%c0_13, %c0_14, %c0_15], %17 {strides = array<i32>} : memref<1x16x16xf32, #tpu.memory_space<vmem>>, vector<1x16x16xf32>,
    } else {
    }
    %c0 = arith.constant 0 : index
    %c0_1 = arith.constant 0 : index
    %c0_2 = arith.constant 0 : index
    %3 = vector.load %arg5[%c0, %c0_1, %c0_2] : memref<1x16x16xf32, #tpu.memory_space<vmem>>, vector<1x16x16xf32>
    %4 = vector.shape_cast %3 : vector<1x16x16xf32> to vector<16x16xf32>
    %c0_3 = arith.constant 0 : index
    %c0_4 = arith.constant 0 : index
    %c0_5 = arith.constant 0 : index
    %5 = vector.load %arg3[%c0_3, %c0_4, %c0_5] : memref<1x16x128xf32, #tpu.memory_space<vmem>>, vector<1x16x128xf32>
    %6 = vector.shape_cast %5 : vector<1x16x128xf32> to vector<16x128xf32>
    %c0_6 = arith.constant 0 : index
    %c0_7 = arith.constant 0 : index
    %c0_8 = arith.constant 0 : index
    %7 = vector.load %arg4[%c0_6, %c0_7, %c0_8] : memref<1x16x128xf32, #tpu.memory_space<vmem>>, vector<1x16x128xf32>
    %8 = vector.shape_cast %7 : vector<1x16x128xf32> to vector<16x128xf32>
    %cst = arith.constant dense<0.000000e+00> : vector<16x16xf32>
    %9 = tpu.matmul %6, %8, %cst {dimension_numbers = #tpu.dot_dimension_numbers<[1], [1], [0], [0], [0, 0, 1, 0], [], []>} : vector<16x128xf32>, vector<16x128xf32>, vector<16x16xf32> -> vector<16x16xf32>
    %10 = arith.addf %4, %9 : vector<16x16xf32>
    %c0_9 = arith.constant 0 : index
    %c0_10 = arith.constant 0 : index
    %c0_11 = arith.constant 0 : index
    %11 = vector.load %arg5[%c0_9, %c0_10, %c0_11] : memref<1x16x16xf32, #tpu.memory_space<vmem>>, vector<1x16x16xf32>
    %12 = vector.shape_cast %11 : vector<1x16x16xf32> to vector<16x16xf32>
    %13 = vector.shape_cast %10 : vector<16x16xf32> to vector<1x16x16xf32>
    tpu.vector_store %arg5[%c0_9, %c0_10, %c0_11], %13 {strides = array<i32>} : memref<1x16x16xf32, #tpu.memory_space<vmem>>, vector<1x16x16xf32>,
    return
  }
  func.func @transform_0(%arg0: i32, %arg1: i32, %arg2: i32) -> (i32, i32, i32) {
    %c0_i32 = arith.constant 0 : i32
    return %arg0, %arg1, %arg2 : i32, i32, i32
  }
  func.func @transform_1(%arg0: i32, %arg1: i32, %arg2: i32) -> (i32, i32, i32) {
    %c0_i32 = arith.constant 0 : i32
    %c0_i32_0 = arith.constant 0 : i32
    return %arg0, %c0_i32, %arg2 : i32, i32, i32
  }
  func.func @transform_2(%arg0: i32, %arg1: i32, %arg2: i32) -> (i32, i32, i32) {
    %c0_i32 = arith.constant 0 : i32
    %c0_i32_0 = arith.constant 0 : i32
    return %arg0, %arg1, %c0_i32 : i32, i32, i32
  }
}

</mosaic_0001>

<bundles_post_ra>
// kernel: tpu_custom_call.1
= control target key start
LH: loop header
LB: loop body
LE: loop exit
PB: predicated region body
PF: predicated region fallthrough
CT: control target
= control target key end

     0   :  { %7 = vsyncpa [#allocation3], 0  ;;  %s915_s0 = inlined_call_operand.hbm [shape: f32[2,16,128], index: 0, kind: input, shape index: {}]   ;;  %s916_s1 = inlined_call_operand.hbm [shape: f32[2,16,128], index: 1, kind: input, shape index: {}]   ;;  %s917_s2 = inlined_call_operand.hbm [shape: f32[2,16,16], index: 2, kind: output, shape index: {}]  }
   0x1   :  { %9 = vsyncpa [#allocation3 + $0x1], 0 }
   0x2   :  { %10 = vsyncpa [#allocation6], 0 }
   0x3   :  { %12 = vsyncpa [#allocation6 + $0x1], 0 }
   0x4   :  { %13 = vsyncpa [#allocation4], 0 }
   0x5   :  { %15 = vsyncpa [#allocation4 + $0x1], 0  ;;  %s730_s9 = smov 0   ;;  %s732_s10 = smov 0  }
   0x6   :  { %s734_s11 = smov 0   ;;  %s736_s12 = smov 0  }
   0x7   :  { %s738_s13 = smov 0   ;;  %s740_s14 = smov 0  }
   0x8 LB: > { %s460_s15 = sadd.s32 4294967295, %s705_s14   ;;  %s461_s16 = sadd.s32 4294967294, %s705_s14   ;;  %s705_s14 = sphi %s740_s14, %s21_s14   ;;  %s701_s13 = sphi %s738_s13, %s928_s13   ;;  %s697_s12 = sphi %s736_s12, %s927_s12   ;;  %s693_s11 = sphi %s734_s11, %s926_s11   ;;  %s689_s10 = sphi %s732_s10, %s925_s10   ;;  %s685_s9 = sphi %s730_s9, %s924_s9  }
   0x9   : > { %s40_s17 = sadd.s32 1, %s701_s13  ;;  %s51_s18 = sadd.s32 1, %s693_s11 }
   0xa   : > { %p42_p0 = scmp.ge.s32.totalorder %s40_s17, 2  ;;  %p58_p1 = scmp.ne.s32.totalorder %s693_s11, %s689_s10 }
   0xb   : > { %p59_p2 = scmp.eq.s32.totalorder %s705_s14, 0  ;;  %p64_p3 = scmp.ne.s32.totalorder %s689_s10, %s685_s9 }
   0xc   : > { %s930_s17 = smov (%p42_p0, %s40_s17), 0  ;;  %p65_p5 = scmp.eq.s32.totalorder %s460_s15, 0 }
   0xd   : > { %p771_p4 = por %p59_p2, %p58_p1  ;;  %s44_s20 = ssub.s32 %s701_s13, %s930_s17 }
   0xe   : > { %p118_p6 = scmp.eq.s32.totalorder %s460_s15, 1  ;;  %p49_p7 = scmp.eq.s32.totalorder %s44_s20, 0 }
   0xf   : > { %p777_p8 = por %p65_p5, %p64_p3  ;;  %p124_p10 = scmp.eq.s32.totalorder %s461_s16, 1 }
  0x10   : > { %p781_p9 = por %p118_p6, %p58_p1  ;;  %p463_p12 = scmp.ge.s32.totalorder %s705_s14, 2 }
  0x11   : > { %s786_s23 = scalar_select %p49_p7, %s693_s11, %s51_s18  }
  0x12   : > { %p788_p11 = por %p124_p10, %p64_p3  ;;  %p510_p13 = scmp.lt.s32.totalorder %s705_s14, 2 }
  0x13   : > { %s795_s25 = sand.u32 1, %s693_s11   ;;  %s479_s27 = sshll.u32 %s701_s13, 8 }
  0x14   : > { %s464_s26 = sshll.u32 %s795_s25, 4  ;;  %s157_s30 = scalar_lea.hbm %s915_s0, %s479_s27 }
  0x15   : > { %s148_s3 = scalar_lea.vmem [#allocation2], %s464_s26  ;;  %p808_p0 = pnand %p510_p13, %p771_p4 }
  0x16   : > { %s158_s4 = sshll.u32 %s148_s3, 4  ;;  %p470_p1 = scmp.ge.s32.totalorder %s705_s14, 1  ;;  %s159_s4 = int_to_ptr.vmem [resolvable:$true] %s158_s4 }
  0x17   : > { %s145_s6 = scalar_lea.sflag [#allocation3], %s795_s25  ;;  %p567_p2 = pneg %p808_p0 }
  0x18   : > { %s578_s7 = scalar_lea.vmem %s159_s4, 256  ;;  %s707_s8 = smov [#allocation2]  }
  0x19   : > { %p579_p3 = scmp.ne.s32.totalorder %s159_s4, %s578_s7  ;;  %s583_s15 = sshll.u32 %s707_s8, 4  ;;  %s584_s15 = int_to_ptr.vmem [resolvable:$false] %s583_s15 }
  0x1a   : > { %s585_s16 = scalar_lea.vmem %s584_s15, 512  ;;  %p586_p4 = scmp.lt.s32.totalorder %s159_s4, %s584_s15 }
  0x1b   : > { %p581_p5 = pnand %p579_p3, %p567_p2  ;;  %p587_p7 = scmp.lt.s32.totalorder %s585_s16, %s578_s7 }
  0x1d   : > { %p582_p6 = pneg %p581_p5  ;;  %p588_p10 = por %p587_p7, %p586_p4 }
  0x1f   : > { %p589_p13 = pnand %p588_p10, %p582_p6 }
  0x21   : > { %592 = shalt.err (!%p589_p13)
}
  0x22   : > { %s708_s18 = smov 128   ;;  %s709_s19 = smov 8  }
  0x23   : > { %502 = dma.hbm_to_vmem [thread:$0]  (!%p808_p0), %s157_s30, 256, %s159_s4, %s145_s6, %s708_s18, %s708_s18, %s709_s19  }
  0x24   : > { %p188_p3 = scmp.lt.s32.totalorder %s705_s14, 3  ;;  %s179_s29 = scalar_lea.hbm %s916_s1, %s479_s27 }
  0x25   : > { %s172_s7 = scalar_lea.vmem [#allocation5], %s464_s26  ;;  %s169_s15 = scalar_lea.sflag [#allocation6], %s795_s25 }
  0x26   : > { %p829_p5 = pnand %p470_p1, %p188_p3  ;;  %s180_s8 = sshll.u32 %s172_s7, 4  ;;  %s181_s8 = int_to_ptr.vmem [resolvable:$true] %s180_s8 }
  0x27   : > { %s606_s16 = scalar_lea.vmem %s181_s8, 256  ;;  %s710_s30 = smov [#allocation5]  }
  0x28   : > { %p607_p6 = scmp.ne.s32.totalorder %s181_s8, %s606_s16  ;;  %s611_s4 = sshll.u32 %s710_s30, 4  ;;  %s612_s4 = int_to_ptr.vmem [resolvable:$false] %s611_s4 }
  0x29   : > { %s613_s27 = scalar_lea.vmem %s612_s4, 512  ;;  %p614_p10 = scmp.lt.s32.totalorder %s181_s8, %s612_s4 }
  0x2a   : > { %p609_p4 = pnand %p607_p6, %p567_p2  ;;  %p615_p1 = scmp.lt.s32.totalorder %s613_s27, %s606_s16 }
  0x2c   : > { %p610_p7 = pneg %p609_p4  ;;  %p616_p13 = por %p615_p1, %p614_p10 }
  0x2e   : > { %p617_p3 = pnand %p616_p13, %p610_p7 }
  0x30   : > { %620 = shalt.err (!%p617_p3)
}
  0x31   : > { %505 = dma.hbm_to_vmem [thread:$0]  (!%p808_p0), %s179_s29, 256, %s181_s8, %s169_s15, %s708_s18, %s708_s18, %s709_s19  }
  0x32   : > { %192 = sbr.rel (%p829_p5) target bundleno = 278 (0x116), region = 28  ;;  %s844_s25 = sand.u32 (!%p829_p5), 1, %s689_s10  }
  0x33   : > { %s471_s26 = sshll.u32 (!%p829_p5), %s844_s25, 4  ;;  %s195_s6 = scalar_lea.sflag (!%p829_p5), [#allocation3], %s844_s25 }
  0x34   : > { %s198_s20 = scalar_lea.vmem (!%p829_p5), [#allocation2], %s471_s26 }
  0x37   : > { %672 = dma.done.wait (%p777_p8), %s195_s6, 256  }
  0x38   : > { %674 = vsyncadd (%p777_p8), %s195_s6, 4294967040  ;;  %s204_s5 = scalar_lea.sflag [#allocation6], %s844_s25  ;;  %s207_s18 = scalar_lea.vmem [#allocation5], %s471_s26 }
  0x39   : > { %676 = dma.done.wait (%p777_p8), %s204_s5, 256  }
  0x3a   : > { %678 = vsyncadd (%p777_p8), %s204_s5, 4294967040  ;;  %vm239_vm0 = vcmask 130048   ;;  %s232_s19 = scalar_lea.vmem [#allocation7], %s471_s26  ;;  %v711_v0 = vmov 0.0   ;;  %v247_v1 = vld [vmem:[%s207_s18 + $0x8] sm:$0xff]  ;;  %v246_v2 = vld [vmem:[%s207_s18] sm:$0xff] }
  0x3b   : > { %241 = vst.msk [vmem:[%s232_s19 + $0x8] sm:$0xff] %vm239_vm0, %v711_v0  ;;  %240 = vst.msk [vmem:[%s232_s19] sm:$0xff] %vm239_vm0, %v711_v0  ;;  %v244_v3 = vld [vmem:[%s198_s20] sm:$0xff]  ;;  %486 = vmatprep.subr.mxu0 %v247_v1  ;;  %v245_v4 = vld [vmem:[%s198_s20 + $0x8] sm:$0xff]  ;;  %s481_s21 = sshll.u32 %s697_s12, 8  ;;  %s344_s28 = sshll.u32 %s232_s19, 4  ;;  %s865_s28 = int_to_ptr.vmem [resolvable:$true] %s344_s28 }
  0x3c   : > { %490 = vmatprep.mubr.f32.mxu0 %v244_v3  ;;  %487 = vmatpush3.xpose.msra.mxu0 %v247_v1  ;;  %s863_s7 = scalar_lea.hbm %s917_s2, %s481_s21  ;;  %s329_s12 = scalar_lea.sflag [#allocation4], %s844_s25 }
  0x3d   : > { %488 = vmatprep.subr.mxu0 %v246_v2  ;;  %s621_s8 = scalar_lea.vmem %s865_s28, 256  ;;  %s712_s15 = smov [#allocation7]  }
  0x3e   : > { %p622_p8 = scmp.ne.s32.totalorder %s865_s28, %s621_s8  ;;  %s625_s16 = sshll.u32 %s712_s15, 4  ;;  %s626_s16 = int_to_ptr.vmem [resolvable:$false] %s625_s16 }
  0x3f   : > { %s627_s30 = scalar_lea.vmem %s626_s16, 512  ;;  %p628_p5 = scmp.lt.s32.totalorder %s865_s28, %s626_s16 }
  0x40   : > { %489 = vmatpush3.xpose.msra.mxu0 %v246_v2  ;;  %p623_p0 = pnand %p622_p8, %p781_p9  ;;  %p629_p6 = scmp.lt.s32.totalorder %s627_s30, %s621_s8 }
  0x42   : > { %v243_v5 = vld [vmem:[%s232_s19 + $0x8] sm:$0xff]  ;;  %v242_v7 = vld [vmem:[%s232_s19] sm:$0xff]  ;;  %p624_p2 = pneg %p623_p0  ;;  %p630_p4 = por %p629_p6, %p628_p5 }
  0x43   : > { %491 = vmatmul.mubr.f32.vlgmr.msra.gmra.mxu0 %v245_v4 }
  0x44   : > { %p631_p7 = pnand %p630_p4, %p624_p2 }
 0x103   : > { %v492_v6 = vpop.f32.mrf.mxu0 }
 0x104   : > { %v324_v8 = vadd.f32 %v492_v6, %v243_v5 }
 0x105   : > { %v314_v9 = vpop.f32.mrf.mxu0 }
 0x106   : > { %327 = vst.msk [vmem:[%s232_s19 + $0x8] sm:$0xff] %vm239_vm0, %v324_v8  ;;  %v323_v10 = vadd.f32 %v314_v9, %v242_v7 }
 0x108   : > { %326 = vst.msk [vmem:[%s232_s19] sm:$0xff] %vm239_vm0, %v323_v10 }
 0x109   : > { %634 = shalt.err (!%p631_p7)
}
 0x10a   : > { %s635_s4 = scalar_lea.hbm %s863_s7, 256  ;;  %s639_s6 = scalar_lea.hbm %s917_s2, 512 }
 0x10b   : > { %p636_p10 = scmp.ne.s32.totalorder %s863_s7, %s635_s4  ;;  %p640_p3 = scmp.lt.s32.totalorder %s863_s7, %s917_s2 }
 0x10c   : > { %p641_p8 = scmp.lt.s32.totalorder %s639_s6, %s635_s4 }
 0x10d   : > { %p637_p1 = pnand %p636_p10, %p781_p9 }
 0x10e   : > { %p642_p0 = por %p641_p8, %p640_p3 }
 0x10f   : > { %p638_p13 = pneg %p637_p1 }
 0x111   : > { %p643_p2 = pnand %p642_p0, %p638_p13 }
 0x113   : > { %646 = shalt.err (!%p643_p2)
}
 0x114   : > { %s713_s18 = smov 128   ;;  %s714_s19 = smov 8  }
 0x115   : > { %497 = dma.vmem_to_hbm [thread:$0]  (%p781_p9), %s865_s28, 256, %s863_s7, %s329_s12, %s713_s18, %s713_s18, %s714_s19  }
 0x116 PF: > { %s359_s21 = sand.u32 1, %s685_s9   ;;  %p507_p5 = pnand %p463_p12, %p788_p11 }
 0x117   : > { %s360_s29 = scalar_lea.sflag [#allocation4], %s359_s21 }
 0x118   : > { %p508_p6 = pneg %p507_p5 }
 0x11a   : > { %680 = dma.done.wait (%p508_p6), %s360_s29, 256  }
 0x11b   : > { %682 = vsyncadd (%p508_p6), %s360_s29, 4294967040  ;;  %s21_s14 = sadd.s32 1, %s705_s14   ;;  %s924_s9 = smov %s689_s10 }
 0x11c   : > { %p18_p4 = scmp.ge.s32.totalorder %s21_s14, 4   ;;  %s925_s10 = smov %s693_s11 }
 0x11d   : > { %s926_s11 = smov %s786_s23  ;;  %s927_s12 = smov %s701_s13 }
 0x11e   : > { %s928_s13 = smov %s930_s17  ;;  %20 = sbr.rel (!%p18_p4) target bundleno = 8 (0x8), region = 90 }
 0x123   :  { %365 = vsyncpa [#allocation3], 1 }
 0x124   :  { %367 = vsyncpa [#allocation3 + $0x1], 1 }
 0x125   :  { %368 = vsyncpa [#allocation6], 1 }
 0x126   :  { %370 = vsyncpa [#allocation6 + $0x1], 1 }
 0x127   :  { %371 = vsyncpa [#allocation4], 1 }
 0x128   :  { %373 = vsyncpa [#allocation4 + $0x1], 1 }

</bundles_post_ra>
